<compile_context>
chip_gen: v7x
topology: tpu7x:2x2x1
jax: 0.10.0
libtpu: 0.0.40
codegen_flags: <defaults>
</compile_context>

<pallas_src>
import functools

import jax
import jax.numpy as jnp
from jax.experimental import pallas as pl
from jax.experimental.pallas import tpu as pltpu


def _mlp_kernel(*refs, num_hidden, lane_dense_out, compute_dtype):
    """refs = (x_ref, w1, b1, ..., wN, bN, out_ref); one batch tile per call."""
    x_ref = refs[0]
    out_ref = refs[-1]
    param_refs = refs[1:-1]

    h = x_ref[...]                       # already in compute dtype (bf16 or f32)

    # Hidden layers: MXU matmul with f32 accumulation, f32 bias-add + ReLU on the
    # VPU, then a single downcast back to the compute dtype for the next layer.
    for layer in range(num_hidden):
        w = param_refs[2 * layer][...]
        b = param_refs[2 * layer + 1][...]        # f32 (1, width)
        h = jnp.dot(h, w, preferred_element_type=jnp.float32)
        h = jnp.maximum(h + b, 0.0)               # activation = ReLU
        # nn.Dropout is the identity in eval mode.
        h = h.astype(compute_dtype)

    w = param_refs[-2][...]
    b = param_refs[-1][...]
    if lane_dense_out:
        # Final (hidden -> 1) projection, emitted lane-dense: w is stored
        # pre-transposed as (1, hidden); contract both operands over their last
        # dim ((1,H) x (TM,H)^T -> (1,TM)), i.e. the standard q @ k^T pattern.
        out = jax.lax.dot_general(
            w, h, (((1,), (1,)), ((), ())),
            preferred_element_type=jnp.float32) + b          # b: (1,1) -> (1,TM)
    else:
        out = jnp.dot(h, w, preferred_element_type=jnp.float32) + b
    out_ref[...] = out.astype(out_ref.dtype)


def _round_up(v, m):
    return ((v + m - 1) // m) * m


def _tpu_config():
    """Generation-aware VMEM request / budget and TensorCore count (perf only)."""
    kind = ""
    try:
        kind = jax.devices()[0].device_kind.lower()
    except Exception:
        pass
    if "v7" in kind or "7x" in kind:          # v7x: 64 MiB VMEM per TC, 2 TCs
        return {"vmem_limit": 56 << 20, "budget": 44 << 20, "num_cores": 2}
    if "v6" in kind or "v5" in kind or "v4" in kind:   # 128 MiB VMEM
        return {"vmem_limit": 96 << 20, "budget": 80 << 20, "num_cores": 1}
    return {"vmem_limit": None, "budget": 28 << 20, "num_cores": 1}  # conservative


def _choose_batch_tile(batch, in_dim, max_width, out_dim, *, x_itemsize,
                       budget, param_bytes, num_cores):
    """Pick the batch-tile (sublane) size TM."""
    # Budget available for per-tile buffers after the VMEM-resident,
    # double-buffered parameters.
    avail = max(budget - 2 * param_bytes, 2 << 20)

    # Narrow MLPs have tiny per-tile compute: amortize the ~0.35us per-grid-step
    # overhead over bigger tiles.
    cap = 512
    if max_width <= 2048:
        cap = 1024
    if max_width <= 512:
        cap = 2048

    def tile_bytes(t):
        return (2 * t * in_dim * x_itemsize        # double-buffered x tile
                + 2 * t * max(out_dim, 1) * 4      # double-buffered out tile
                + 3 * t * max_width * 4)           # live activation slabs (f32 bound)

    tm = cap
    while tm > 8 and tile_bytes(tm) > avail:
        tm //= 2

    if batch <= 8:
        return batch                      # single block equal to the full dim
    tm = min(tm, (batch // 8) * 8)        # keep block <= array, multiple of 8
    tm = max(8, (tm // 8) * 8)

    # v7x megacore: prefer >=2 (ideally even) grid steps so both TCs get work.
    if num_cores >= 2 and batch > 256:
        grid = pl.cdiv(batch, tm)
        if grid == 1:
            tm = max(128, _round_up(pl.cdiv(batch, 2), 8))
            grid = pl.cdiv(batch, tm)
        if grid > 1 and grid % 2 == 1:
            tm2 = max(128, _round_up(pl.cdiv(batch, grid + 1), 8))
            if pl.cdiv(batch, tm2) % 2 == 0:
                tm = tm2
    return tm


def disc_net_forward(x, params, *, use_bf16=True):
    """Fused DiscNet forward (eval-mode dropout).

    x:       (batch, input_dim) float
    params:  list of (W, b) with W: (in_dim, out_dim), b: (1, out_dim)
    returns: (batch, output_dim) float32
    """
    num_linear = len(params)
    batch, in_dim = x.shape
    out_dim = params[-1][0].shape[1]
    lane_dense = out_dim == 1
    compute_dtype = jnp.bfloat16 if use_bf16 else jnp.float32
    x_itemsize = jnp.dtype(compute_dtype).itemsize

    # --- parameter layout ---------------------------------------------------
    flat_params = []
    for li, (w, b) in enumerate(params):
        last = li == num_linear - 1
        w = jnp.asarray(w)
        b = jnp.asarray(b, jnp.float32).reshape(1, -1)
        if last and lane_dense:
            flat_params.append(w.astype(compute_dtype).T)     # (1, hidden)
        else:
            flat_params.append(w.astype(compute_dtype))        # (in, out)
        flat_params.append(b)                                   # (1, out) f32
    param_bytes = sum(int(p.size) * p.dtype.itemsize for p in flat_params)

    # --- tiling -------------------------------------------------------------
    cfg = _tpu_config()
    widths = [in_dim] + [w.shape[1] for w, _ in params]
    tm = _choose_batch_tile(batch, in_dim, max(widths), out_dim,
                            x_itemsize=x_itemsize, budget=cfg["budget"],
                            param_bytes=param_bytes, num_cores=cfg["num_cores"])
    grid = pl.cdiv(batch, tm)

    # No host-side padding: the ragged last input block is clipped by Pallas and
    # its garbage tail rows are row-independent (sliced off below).
    x_in = x.astype(compute_dtype)

    in_specs = [pl.BlockSpec((tm, in_dim), lambda i: (i, 0))]
    for p in flat_params:
        # Constant index map -> parameter block stays VMEM-resident across tiles.
        in_specs.append(pl.BlockSpec(p.shape, lambda i: (0, 0)))

    if lane_dense:
        # Lane-dense output: one (1, TM) row per tile, batch along lanes.
        out_shape = jax.ShapeDtypeStruct((grid, tm), jnp.float32)
        out_specs = pl.BlockSpec((1, tm), lambda i: (i, 0))
    else:
        out_shape = jax.ShapeDtypeStruct((batch, out_dim), jnp.float32)
        out_specs = pl.BlockSpec((tm, out_dim), lambda i: (i, 0))

    flops = 2 * batch * sum(int(w.shape[0]) * int(w.shape[1]) for w, _ in params)
    out_elems = grid * tm if lane_dense else batch * out_dim
    bytes_accessed = int(batch * in_dim * x_itemsize + param_bytes + out_elems * 4)
    cost = pl.CostEstimate(flops=flops, transcendentals=0,
                           bytes_accessed=bytes_accessed)

    kernel = functools.partial(
        _mlp_kernel, num_hidden=num_linear - 1,
        lane_dense_out=lane_dense, compute_dtype=compute_dtype)

    out = pl.pallas_call(
        kernel,
        out_shape=out_shape,
        grid=(grid,),
        in_specs=in_specs,
        out_specs=out_specs,
        compiler_params=pltpu.CompilerParams(
            dimension_semantics=("parallel",),
            vmem_limit_bytes=cfg["vmem_limit"],
        ),
        cost_estimate=cost,
    )(x_in, *flat_params)

    if lane_dense:
        return out.reshape(-1, 1)[:batch]
    return out


def init_disc_net_params(key, input_dim, hidden_dims, output_dim=1):
    """Deterministic init mirroring torch.nn.Linear defaults (U[-1/sqrt(fan_in), +])."""
    dims = [input_dim] + list(hidden_dims) + [output_dim]
    params = []
    for i in range(len(dims) - 1):
        fan_in, fan_out = dims[i], dims[i + 1]
        key, kw, kb = jax.random.split(key, 3)
        bound = 1.0 / float(fan_in) ** 0.5
        w = jax.random.uniform(kw, (fan_in, fan_out), jnp.float32, -bound, bound)
        b = jax.random.uniform(kb, (1, fan_out), jnp.float32, -bound, bound)
        params.append((w, b))
    return params


def disc_net_reference(x, params, *, use_bf16=True):
    """Pure-JAX reference mirroring the kernel's dtype choices."""
    cd = jnp.bfloat16 if use_bf16 else jnp.float32
    h = x.astype(cd)
    n = len(params)
    for i, (w, b) in enumerate(params):
        last = i == n - 1
        hi = jnp.dot(h.astype(cd), w.astype(cd), preferred_element_type=jnp.float32) + b
        if last:
            return hi
        h = jnp.maximum(hi, 0.0).astype(cd)
    return h


if __name__ == "__main__":
    key = jax.random.PRNGKey(0)
    batch, input_dim = 8, 16
    hidden_dims = [32, 32]

    key, kx = jax.random.split(key)
    x = jax.random.normal(kx, (batch, input_dim), jnp.float32)
    params = init_disc_net_params(key, input_dim, list(hidden_dims), output_dim=1)

    # Default bf16-MXU path (lane-dense out_dim=1 output).
    out = jax.block_until_ready(disc_net_forward(x, params))
    ref = disc_net_reference(x, params, use_bf16=True)
    assert out.shape == (batch, 1), out.shape
    assert jnp.allclose(out, ref, atol=2e-3, rtol=2e-3), (out, ref)

    # Pure f32 path against the exact f32 reference.
    out_f32 = jax.block_until_ready(disc_net_forward(x, params, use_bf16=False))
    ref_f32 = disc_net_reference(x, params, use_bf16=False)
    assert jnp.allclose(out_f32, ref_f32, atol=3e-4, rtol=3e-4), (out_f32, ref_f32)

    # Multi-tile + ragged batch (no host-side pad; garbage tail rows discarded).
    batch2 = 1100
    key, kx2 = jax.random.split(key)
    x2 = jax.random.normal(kx2, (batch2, input_dim), jnp.float32)
    out2 = jax.block_until_ready(disc_net_forward(x2, params))
    ref2 = disc_net_reference(x2, params, use_bf16=True)
    assert out2.shape == (batch2, 1), out2.shape
    assert jnp.allclose(out2, ref2, atol=2e-3, rtol=2e-3), (out2, ref2)

    # out_dim > 1 exercises the generic (non-lane-dense) output path.
    params4 = init_disc_net_params(jax.random.PRNGKey(1), input_dim, [32], output_dim=4)
    batch3 = 40
    x3 = jax.random.normal(jax.random.PRNGKey(2), (batch3, input_dim), jnp.float32)
    out3 = jax.block_until_ready(disc_net_forward(x3, params4))
    ref3 = disc_net_reference(x3, params4, use_bf16=True)
    assert out3.shape == (batch3, 4), out3.shape
    assert jnp.allclose(out3, ref3, atol=2e-3, rtol=2e-3), (out3, ref3)

    print("KERNEL_OK")
</pallas_src>

<mosaic_0001>
module attributes {stable_mosaic.version = 11 : i64} {
  func.func @_mlp_kernel(%arg0: i32, %arg1: memref<8x16xbf16, #tpu.memory_space<vmem>>, %arg2: memref<16x32xbf16, #tpu.memory_space<vmem>>, %arg3: memref<1x32xf32, #tpu.memory_space<vmem>>, %arg4: memref<32x32xbf16, #tpu.memory_space<vmem>>, %arg5: memref<1x32xf32, #tpu.memory_space<vmem>>, %arg6: memref<1x32xbf16, #tpu.memory_space<vmem>>, %arg7: memref<1x1xf32, #tpu.memory_space<vmem>>, %arg8: memref<1x8xf32, #tpu.memory_space<vmem>>) attributes {dimension_semantics = [#tpu.dimension_semantics<parallel>], iteration_bounds = array<i64: 1>, scalar_prefetch = 0 : i64, scratch_operands = 0 : i64, tpu.core_type = #tpu.core_type<tc>, window_params = [{transform_indices = @transform_0, window_bounds = array<i64: 8, 16>}, {pipeline_mode = #tpu.pipeline_mode<synchronous>, transform_indices = @transform_1, window_bounds = array<i64: 16, 32>}, {pipeline_mode = #tpu.pipeline_mode<synchronous>, transform_indices = @transform_2, window_bounds = array<i64: 1, 32>}, {pipeline_mode = #tpu.pipeline_mode<synchronous>, transform_indices = @transform_3, window_bounds = array<i64: 32, 32>}, {pipeline_mode = #tpu.pipeline_mode<synchronous>, transform_indices = @transform_4, window_bounds = array<i64: 1, 32>}, {pipeline_mode = #tpu.pipeline_mode<synchronous>, transform_indices = @transform_5, window_bounds = array<i64: 1, 32>}, {pipeline_mode = #tpu.pipeline_mode<synchronous>, transform_indices = @transform_6, window_bounds = array<i64: 1, 1>}, {transform_indices = @transform_7, window_bounds = array<i64: 1, 8>}]} {
    %c0 = arith.constant 0 : index
    %c0_0 = arith.constant 0 : index
    %0 = vector.load %arg1[%c0, %c0_0] : memref<8x16xbf16, #tpu.memory_space<vmem>>, vector<8x16xbf16>
    %c0_1 = arith.constant 0 : index
    %c0_2 = arith.constant 0 : index
    %1 = vector.load %arg2[%c0_1, %c0_2] : memref<16x32xbf16, #tpu.memory_space<vmem>>, vector<16x32xbf16>
    %c0_3 = arith.constant 0 : index
    %c0_4 = arith.constant 0 : index
    %2 = vector.load %arg3[%c0_3, %c0_4] : memref<1x32xf32, #tpu.memory_space<vmem>>, vector<1x32xf32>
    %cst = arith.constant dense<0.000000e+00> : vector<8x32xf32>
    %3 = tpu.matmul %0, %1, %cst {dimension_numbers = #tpu.dot_dimension_numbers<[1], [0], [0], [1], [0, 0, 1, 1], [], []>} : vector<8x16xbf16>, vector<16x32xbf16>, vector<8x32xf32> -> vector<8x32xf32>
    %4 = vector.broadcast %2 : vector<1x32xf32> to vector<8x32xf32>
    %5 = arith.addf %3, %4 : vector<8x32xf32>
    %cst_5 = arith.constant 0.000000e+00 : f32
    %6 = vector.broadcast %cst_5 : f32 to vector<8x32xf32>
    %7 = arith.maximumf %5, %6 : vector<8x32xf32>
    %8 = arith.truncf %7 : vector<8x32xf32> to vector<8x32xbf16>
    %c0_6 = arith.constant 0 : index
    %c0_7 = arith.constant 0 : index
    %9 = vector.load %arg4[%c0_6, %c0_7] : memref<32x32xbf16, #tpu.memory_space<vmem>>, vector<32x32xbf16>
    %c0_8 = arith.constant 0 : index
    %c0_9 = arith.constant 0 : index
    %10 = vector.load %arg5[%c0_8, %c0_9] : memref<1x32xf32, #tpu.memory_space<vmem>>, vector<1x32xf32>
    %cst_10 = arith.constant dense<0.000000e+00> : vector<8x32xf32>
    %11 = tpu.matmul %8, %9, %cst_10 {dimension_numbers = #tpu.dot_dimension_numbers<[1], [0], [0], [1], [0, 0, 1, 1], [], []>} : vector<8x32xbf16>, vector<32x32xbf16>, vector<8x32xf32> -> vector<8x32xf32>
    %12 = vector.broadcast %10 : vector<1x32xf32> to vector<8x32xf32>
    %13 = arith.addf %11, %12 : vector<8x32xf32>
    %cst_11 = arith.constant 0.000000e+00 : f32
    %14 = vector.broadcast %cst_11 : f32 to vector<8x32xf32>
    %15 = arith.maximumf %13, %14 : vector<8x32xf32>
    %16 = arith.truncf %15 : vector<8x32xf32> to vector<8x32xbf16>
    %c0_12 = arith.constant 0 : index
    %c0_13 = arith.constant 0 : index
    %17 = vector.load %arg6[%c0_12, %c0_13] : memref<1x32xbf16, #tpu.memory_space<vmem>>, vector<1x32xbf16>
    %c0_14 = arith.constant 0 : index
    %c0_15 = arith.constant 0 : index
    %18 = vector.load %arg7[%c0_14, %c0_15] : memref<1x1xf32, #tpu.memory_space<vmem>>, vector<1x1xf32>
    %cst_16 = arith.constant dense<0.000000e+00> : vector<1x8xf32>
    %19 = tpu.matmul %17, %16, %cst_16 {dimension_numbers = #tpu.dot_dimension_numbers<[1], [1], [0], [0], [0, 0, 1, 0], [], []>} : vector<1x32xbf16>, vector<8x32xbf16>, vector<1x8xf32> -> vector<1x8xf32>
    %20 = vector.broadcast %18 : vector<1x1xf32> to vector<1x8xf32>
    %21 = arith.addf %19, %20 : vector<1x8xf32>
    %c0_17 = arith.constant 0 : index
    %c0_18 = arith.constant 0 : index
    %22 = vector.load %arg8[%c0_17, %c0_18] : memref<1x8xf32, #tpu.memory_space<vmem>>, vector<1x8xf32>
    tpu.vector_store %arg8[%c0_17, %c0_18], %21 {strides = array<i32>} : memref<1x8xf32, #tpu.memory_space<vmem>>, vector<1x8xf32>,
    return
  }
  func.func @transform_0(%arg0: i32) -> (i32, i32) {
    %c0_i32 = arith.constant 0 : i32
    %c0_i32_0 = arith.constant 0 : i32
    return %arg0, %c0_i32 : i32, i32
  }
  func.func @transform_1(%arg0: i32) -> (i32, i32) {
    %c0_i32 = arith.constant 0 : i32
    %c0_i32_0 = arith.constant 0 : i32
    %c0_i32_1 = arith.constant 0 : i32
    return %c0_i32, %c0_i32_0 : i32, i32
  }
  func.func @transform_2(%arg0: i32) -> (i32, i32) {
    %c0_i32 = arith.constant 0 : i32
    %c0_i32_0 = arith.constant 0 : i32
    %c0_i32_1 = arith.constant 0 : i32
    return %c0_i32, %c0_i32_0 : i32, i32
  }
  func.func @transform_3(%arg0: i32) -> (i32, i32) {
    %c0_i32 = arith.constant 0 : i32
    %c0_i32_0 = arith.constant 0 : i32
    %c0_i32_1 = arith.constant 0 : i32
    return %c0_i32, %c0_i32_0 : i32, i32
  }
  func.func @transform_4(%arg0: i32) -> (i32, i32) {
    %c0_i32 = arith.constant 0 : i32
    %c0_i32_0 = arith.constant 0 : i32
    %c0_i32_1 = arith.constant 0 : i32
    return %c0_i32, %c0_i32_0 : i32, i32
  }
  func.func @transform_5(%arg0: i32) -> (i32, i32) {
    %c0_i32 = arith.constant 0 : i32
    %c0_i32_0 = arith.constant 0 : i32
    %c0_i32_1 = arith.constant 0 : i32
    return %c0_i32, %c0_i32_0 : i32, i32
  }
  func.func @transform_6(%arg0: i32) -> (i32, i32) {
    %c0_i32 = arith.constant 0 : i32
    %c0_i32_0 = arith.constant 0 : i32
    %c0_i32_1 = arith.constant 0 : i32
    return %c0_i32, %c0_i32_0 : i32, i32
  }
  func.func @transform_7(%arg0: i32) -> (i32, i32) {
    %c0_i32 = arith.constant 0 : i32
    %c0_i32_0 = arith.constant 0 : i32
    return %arg0, %c0_i32 : i32, i32
  }
}

</mosaic_0001>

<bundles_post_ra>
// kernel: tpu_custom_call.1
= control target key start
LH: loop header
LB: loop body
LE: loop exit
PB: predicated region body
PF: predicated region fallthrough
CT: control target
= control target key end

     0   :  { %s535_s0 = inlined_call_operand.hbm [shape: bf16[8,16], index: 0, kind: input, shape index: {}]   ;;  %s536_s1 = inlined_call_operand.hbm [shape: bf16[16,32], index: 1, kind: input, shape index: {}]   ;;  %s537_s2 = inlined_call_operand.vmem [shape: f32[1,32], index: 2, kind: input, shape index: {}]   ;;  %s538_s3 = inlined_call_operand.hbm [shape: bf16[32,32], index: 3, kind: input, shape index: {}]   ;;  %s539_s4 = inlined_call_operand.vmem [shape: f32[1,32], index: 4, kind: input, shape index: {}]   ;;  %s540_s5 = inlined_call_operand.vmem [shape: bf16[1,32], index: 5, kind: input, shape index: {}]   ;;  %s541_s6 = inlined_call_operand.<no memory space> [shape: f32[1,1], index: 6, kind: input, shape index: {}]   ;;  %s542_s7 = inlined_call_operand.hbm [shape: f32[1,8], index: 7, kind: output, shape index: {}]  }
   0x1   :  { %v12_v0 = vstv %s541_s6 }
   0x2   :  { %13 = vst [vmem:[#allocation2] sm:$0x1] %v12_v0 }
   0x3   :  { %14 = vsyncpa [#allocation4], 0 }
   0x4   :  { %15 = vsyncpa [#allocation7], 0 }
   0x5   :  { %16 = vsyncpa [#allocation5], 0  ;;  %s417_s26 = smov [#allocation6]   ;;  %s323_s30 = scalar_lea.hbm %s536_s1, 128 }
   0x6   :  { %s32_s27 = sshll.u32 %s417_s26, 4  ;;  %p324_p0 = scmp.ne.s32.totalorder %s536_s1, %s323_s30  ;;  %s33_s27 = int_to_ptr.vmem [resolvable:$true] %s32_s27 }
   0x7   :  { %p327_p1 = scmp.lt.u32.totalorder %s323_s30, %s536_s1 }
   0x9   :  { %p329_p2 = pnand %p327_p1, %p324_p0 }
   0xb   :  { %332 = shalt.err (!%p329_p2)
}
   0xc   :  { %s333_s6 = scalar_lea.vmem %s33_s27, 128  ;;  %p338_p4 = scmp.lt.s32.totalorder %s33_s27, %s33_s27 }
   0xd   :  { %p334_p3 = scmp.ne.s32.totalorder %s33_s27, %s333_s6  ;;  %p339_p5 = scmp.lt.s32.totalorder %s333_s6, %s333_s6 }
   0xf   :  { %p340_p6 = por %p339_p5, %p338_p4 }
  0x11   :  { %p341_p7 = pnand %p340_p6, %p334_p3 }
  0x13   :  { %344 = shalt.err (!%p341_p7)
}
  0x14   :  { %s418_s12 = smov 64   ;;  %s419_s13 = smov 4  }
  0x15   :  { %38 = dma.hbm_to_vmem [thread:$0]  %s536_s1, 128, %s33_s27, [#allocation7], %s418_s12, %s418_s12, %s419_s13  }
  0x16   :  { %s420_s16 = smov [#allocation3]   ;;  %s421_s18 = smov [#allocation8]  }
  0x17   :  { %s23_s17 = sshll.u32 %s420_s16, 4  ;;  %s46_s19 = sshll.u32 %s421_s18, 4  ;;  %s24_s17 = int_to_ptr.vmem [resolvable:$true] %s23_s17  ;;  %s47_s19 = int_to_ptr.vmem [resolvable:$true] %s46_s19 }
  0x18   :  { %s345_s22 = scalar_lea.hbm %s535_s0, 64 }
  0x19   :  { %p346_p8 = scmp.ne.s32.totalorder %s535_s0, %s345_s22  ;;  %p349_p9 = scmp.lt.u32.totalorder %s345_s22, %s535_s0 }
  0x1b   :  { %p351_p10 = pnand %p349_p9, %p346_p8 }
  0x1d   :  { %354 = shalt.err (!%p351_p10)
}
  0x1e   :  { %s355_s1 = scalar_lea.vmem %s24_s17, 64  ;;  %p360_p12 = scmp.lt.s32.totalorder %s24_s17, %s24_s17 }
  0x1f   :  { %p356_p11 = scmp.ne.s32.totalorder %s24_s17, %s355_s1  ;;  %p361_p13 = scmp.lt.s32.totalorder %s355_s1, %s355_s1 }
  0x21   :  { %p362_p0 = por %p361_p13, %p360_p12 }
  0x23   :  { %p363_p1 = pnand %p362_p0, %p356_p11 }
  0x25   :  { %366 = shalt.err (!%p363_p1)
}
  0x26   :  { %26 = dma.hbm_to_vmem [thread:$0]  %s535_s0, 64, %s24_s17, [#allocation4]  }
  0x27   :  { %s367_s8 = scalar_lea.hbm %s538_s3, 256 }
  0x28   :  { %p368_p2 = scmp.ne.s32.totalorder %s538_s3, %s367_s8  ;;  %p371_p3 = scmp.lt.u32.totalorder %s367_s8, %s538_s3 }
  0x2a   :  { %p373_p4 = pnand %p371_p3, %p368_p2 }
  0x2c   :  { %376 = shalt.err (!%p373_p4)
}
  0x2d   :  { %s377_s14 = scalar_lea.vmem %s47_s19, 256  ;;  %p382_p6 = scmp.lt.s32.totalorder %s47_s19, %s47_s19 }
  0x2e   :  { %p378_p5 = scmp.ne.s32.totalorder %s47_s19, %s377_s14  ;;  %p383_p7 = scmp.lt.s32.totalorder %s377_s14, %s377_s14 }
  0x30   :  { %p384_p8 = por %p383_p7, %p382_p6 }
  0x32   :  { %p385_p9 = pnand %p384_p8, %p378_p5 }
  0x34   :  { %388 = shalt.err (!%p385_p9)
}
  0x35   :  { %52 = dma.hbm_to_vmem [thread:$0]  %s538_s3, 256, %s47_s19, [#allocation7], %s418_s12, %s418_s12, %s419_s13  }
  0x36   :  { %411 = dma.done.wait [#allocation4], 64  }
  0x37   :  { %412 = vsyncadd [#allocation4], 4294967232 }
  0x38   :  { %413 = dma.done.wait [#allocation7], 384  }
  0x39   :  { %414 = vsyncadd [#allocation7], 4294966912  ;;  %v422_v1 = vmov 0.0   ;;  %vm423_vm0 = vmmov 0   ;;  %v320_v2 = vld [vmem:[#allocation6] sm:$0xff]   ;;  %vm85_vm1 = vcmask 130048   ;;  %v207_v26 = vlaneseq }
  0x3a   :  { %290 = vmatprep.subr.bf16.mxu0 %v422_v1  ;;  %292 = vmatprep.mubr.msk.bf16.mxu0 %vm423_vm0, %v422_v1  ;;  %v69_v3 = vld [vmem:[#allocation3] sm:$0xf]  ;;  %v321_v4 = vld [vmem:[#allocation8] sm:$0xff]   ;;  %v322_v5 = vld [vmem:[#allocation8 + $0x8] sm:$0xff]   ;;  %vm154_vm2 = vcmask 261120   ;;  %v424_v15 = vmov 0  }
  0x3b   :  { %296 = vmatprep.subr.bf16.mxu1 %v422_v1  ;;  %300 = vmatprep.mubr.msk.bf16.mxu1 %vm423_vm0, %v422_v1  ;;  %v275_v6 = vld [vmem:[%s537_s2] ss:$0 sm:$0xff]  ;;  %v208_v27 = vshrl.u32 %v207_v26, 7  ;;  %vm257_vm3 = vcmask 57344  }
  0x3c   :  { %291 = vmatpush3.bf16.msra.mxu0 %v320_v2  ;;  %297 = vmatpush3.bf16.msra.mxu1 %v321_v4  ;;  %v201_v14 = vld [vmem:[#allocation2] sm:$0x1] }
  0x3d   :  { %304 = vmatprep.subr.bf16.mxu0 %v422_v1  ;;  %298 = vmatprep.subr.bf16.mxu1 %v422_v1  ;;  %v278_v16 = vld [vmem:[%s539_s4] ss:$0 sm:$0xff]  ;;  %v209_v28 = vsub.s32 0, %v208_v27  ;;  %s425_s4 = smov [#allocation9]  }
  0x3e   :  { %319 = vset.pattern.permute.xlu0 %v424_v15  ;;  %v200_v25 = vld [vmem:[%s540_s5] sm:$0x1]  ;;  %s265_s18 = sshll.u32 %s425_s4, 4  ;;  %s266_s18 = int_to_ptr.vmem [resolvable:$true] %s265_s18 }
  0x3f   :  { %293 = vmatmul.mubr.msk.bf16.vlgmr.msra.gmra.mrb[0].mxu0 %vm85_vm1, %v69_v3  ;;  %204 = vperm.xlu0 %319, %v201_v14   ;;  %s389_s19 = scalar_lea.vmem %s266_s18, 16  ;;  %s393_s5 = scalar_lea.vmem %s266_s18, 32 }
  0x40   :  { %306 = vmatprep.mubr.msk.bf16.mxu0 %vm423_vm0, %v422_v1  ;;  %299 = vmatpush3.bf16.msra.mxu1 %v322_v5  ;;  %p390_p10 = scmp.ne.s32.totalorder %s266_s18, %s389_s19  ;;  %p394_p11 = scmp.lt.s32.totalorder %s266_s18, %s266_s18 }
  0x41   :  { %p395_p12 = scmp.lt.s32.totalorder %s393_s5, %s389_s19 }
  0x43   :  { %p396_p13 = por %p395_p12, %p394_p11 }
  0x45   :  { %p397_p0 = pnand %p396_p13, %p390_p10 }
  0xbe   :  { %v205_v29 = vpop.permute.xlu0 %204 }
  0xbf   :  { %v210_v30 = vrot.slane %v205_v29, %v209_v28 }
 0x112   :  { %v123_v7 = vpop.f32.mrb[0].mxu0 }
 0x113   :  { %v124_v8 = vadd.f32 %v275_v6, %v123_v7  ;;  %v294_v9 = vpop.f32.mrb[1].mxu0 }
 0x114   :  { %v126_v10 = vpop.f32.mrb[2].mxu0 }
 0x115   :  { %v129_v11 = vmax.f32 %v124_v8, 0.0  ;;  %v295_v12 = vpop.f32.mrb[3].mxu0 }
 0x117   :  { %v130_v13 = vpack.c.bf16 %v129_v11, %v129_v11 }
 0x119   :  { %301 = vmatmul.mubr.msk.bf16.vlgmr.msra.gmra.mrb[0].mxu1 %vm154_vm2, %v130_v13 }
 0x1ec   :  { %v192_v17 = vpop.f32.mrb[0].mxu1 }
 0x1ed   :  { %v193_v18 = vadd.f32 %v278_v16, %v192_v17  ;;  %v302_v19 = vpop.f32.mrb[1].mxu1 }
 0x1ee   :  { %v195_v20 = vpop.f32.mrb[2].mxu1 }
 0x1ef   :  { %v198_v21 = vmax.f32 %v193_v18, 0.0  ;;  %v303_v22 = vpop.f32.mrb[3].mxu1 }
 0x1f1   :  { %v199_v23 = vpack.c.bf16 %v198_v21, %v198_v21 }
 0x1f3   :  { %v215_v24 = vsel %vm154_vm2, %v199_v23, 0 }
 0x1f4   :  { %305 = vmatpush3.bf16.xpose.msra.mxu0 %v215_v24 }
 0x1fb   :  { %307 = vmatmul.mubr.msk.bf16.vlgmr.msra.gmra.mrb[4].mxu0 %vm154_vm2, %v200_v25 }
 0x2ce   :  { %v251_v31 = vpop.f32.mrb[4].mxu0 }
 0x2cf   :  { %v252_v32 = vadd.f32 %v251_v31, %v210_v30  ;;  %v308_v33 = vpop.f32.mrb[5].mxu0 }
 0x2d0   :  { %v254_v34 = vpop.f32.mrb[6].mxu0 }
 0x2d1   :  { %v309_v35 = vpop.f32.mrb[7].mxu0  ;;  %258 = vst.msk [vmem:[#allocation9] sm:$0x1] %vm257_vm3, %v252_v32 }
 0x2d2   :  { %400 = shalt.err (!%p397_p0)
}
 0x2d3   :  { %s401_s22 = scalar_lea.hbm %s542_s7, 16 }
 0x2d4   :  { %p402_p1 = scmp.ne.s32.totalorder %s542_s7, %s401_s22  ;;  %p405_p2 = scmp.lt.u32.totalorder %s401_s22, %s542_s7 }
 0x2d6   :  { %p407_p3 = pnand %p405_p2, %p402_p1 }
 0x2d8   :  { %410 = shalt.err (!%p407_p3)
}
 0x2d9   :  { %268 = dma.vmem_to_hbm [thread:$0]  %s266_s18, 16, %s542_s7, [#allocation5]  }
 0x2da   :  { %415 = dma.done.wait [#allocation5], 16  }
 0x2db   :  { %416 = vsyncadd [#allocation5], 4294967280 }
 0x2dc   :  { %272 = vsyncpa [#allocation4], 1 }
 0x2dd   :  { %273 = vsyncpa [#allocation7], 1 }
 0x2de   :  { %274 = vsyncpa [#allocation5], 1 }

</bundles_post_ra>
